<compile_context>
chip_gen: v7x
topology: tpu7x:2x2x1
jax: 0.10.0
libtpu: 0.0.40
codegen_flags: <defaults>
</compile_context>

<pallas_src>
import functools

import jax
import jax.numpy as jnp
from jax.experimental import pallas as pl
from jax.experimental.pallas import tpu as pltpu

_LANES = 128
_SUBLANES = 8


def _round_up(x: int, m: int) -> int:
    return ((x + m - 1) // m) * m


def _mlp_combine_kernel(xm_ref, xn_ref, wm_ref, wn_ref, b_ref, o_ref, *,
                        compute_dtype):
    """One grid step: o = x_m @ W_m + x_n @ W_n + b (f32 accumulate).

    Two small dots replace the concat + packed-K scratch: no per-step zero
    fill, no K padding, and the dtype cast rides the activation load.
    """
    xm = xm_ref[...].astype(compute_dtype)   # no-op when dtypes already match
    xn = xn_ref[...].astype(compute_dtype)

    acc = jnp.dot(xm, wm_ref[...], preferred_element_type=jnp.float32)
    acc = acc + jnp.dot(xn, wn_ref[...], preferred_element_type=jnp.float32)

    # f32 bias add + cast epilogue on the VPU (safe on v5e: no bf16 VPU math).
    o_ref[...] = (acc + b_ref[...]).astype(o_ref.dtype)


def prepare_mlp_combination_params(w, b, om, rg, compute_dtype=None):
    """One-time packing of nn.Linear params (hoisted off the per-call path).

    w: [self_out, om + rg] (PyTorch nn.Linear layout), b: [self_out].
    Returns:
      w_m: [om, self_out]  weight slab multiplying x_m
      w_n: [rg, self_out]  weight slab multiplying x_n
      b2:  [1, self_out]   float32 bias (epilogue stays f32)
    """
    self_out, k = w.shape
    assert k == om + rg

    w_t = jnp.asarray(w).T                         # [om + rg, self_out]
    if compute_dtype is not None:
        w_t = w_t.astype(compute_dtype)            # e.g. bf16 on v6e/v7x

    w_m = w_t[:om]                                 # [om, self_out]
    w_n = w_t[om:]                                 # [rg, self_out]
    b2 = jnp.asarray(b).astype(jnp.float32).reshape(1, self_out)
    return w_m, w_n, b2


def mlp_feature_combination(x_m, x_n, w_m, w_n, b2, *, block_b=None):
    """Per-call path: y = concat(x_m, x_n) @ W.T + b, using prepacked params."""
    B, om = x_m.shape
    Bn, rg = x_n.shape
    assert B == Bn
    assert w_m.shape[0] == om and w_n.shape[0] == rg
    self_out = w_m.shape[1]
    assert w_n.shape[1] == self_out and b2.shape == (1, self_out)

    out_dtype = x_m.dtype
    compute_dtype = w_m.dtype

    # Batch tile: multiple of 8 sublanes, cap 2048 rows (mem-bound kernels are
    # near roofline by 512-1024 rows).  Derive it so the grid has >= 4 steps
    # when B allows -> v7x's 2 TensorCores both get a pipelined loop; this is
    # neutral on single-TC v5e/v6e.  Even at block_b=2048 the double-buffered
    # I/O tiles + resident weights are well under 2 MiB of VMEM.
    if block_b is None:
        cap = 2048
        target = _round_up(pl.cdiv(B, 4), _SUBLANES)
        block_b = max(_SUBLANES, min(cap, target))
        block_b = min(block_b, _round_up(B, _SUBLANES))
    grid = (pl.cdiv(B, block_b),)

    kernel = functools.partial(_mlp_combine_kernel, compute_dtype=compute_dtype)

    itemsize = jnp.dtype(out_dtype).itemsize
    cost = pl.CostEstimate(
        flops=2 * B * (om + rg) * self_out,
        transcendentals=0,
        bytes_accessed=(B * om * itemsize + B * rg * itemsize
                        + w_m.size * jnp.dtype(compute_dtype).itemsize
                        + w_n.size * jnp.dtype(compute_dtype).itemsize
                        + b2.size * 4
                        + B * self_out * itemsize),
    )

    return pl.pallas_call(
        kernel,
        out_shape=jax.ShapeDtypeStruct((B, self_out), out_dtype),
        grid_spec=pltpu.PrefetchScalarGridSpec(
            num_scalar_prefetch=0,
            grid=grid,
            in_specs=[
                pl.BlockSpec((block_b, om), lambda i: (i, 0)),       # x_m tile
                pl.BlockSpec((block_b, rg), lambda i: (i, 0)),       # x_n tile
                pl.BlockSpec((om, self_out), lambda i: (0, 0)),      # W_m (resident)
                pl.BlockSpec((rg, self_out), lambda i: (0, 0)),      # W_n (resident)
                pl.BlockSpec((1, self_out), lambda i: (0, 0)),       # bias (resident)
            ],
            out_specs=pl.BlockSpec((block_b, self_out), lambda i: (i, 0)),
        ),
        compiler_params=pltpu.CompilerParams(
            # Independent batch rows -> shard grid across v7x's 2 TensorCores;
            # neutral on single-TC v5e/v6e.
            dimension_semantics=("parallel",),
            # Explicit with plenty of headroom: safe on v5e/v6e (128 MiB) and
            # v7x (64 MiB physical VMEM).
            vmem_limit_bytes=32 * 1024 * 1024,
        ),
        cost_estimate=cost,
    )(x_m, x_n, w_m, w_n, b2)


if __name__ == "__main__":
    # Small shapes consistent with the module's forward.
    B = 8
    om_output_size = 16
    rg_output_size = 16
    self_output_size = 32

    key = jax.random.PRNGKey(0)
    k_xm, k_xn, k_w, k_b = jax.random.split(key, 4)

    x_m = jax.random.normal(k_xm, (B, om_output_size), dtype=jnp.float32)
    x_n = jax.random.normal(k_xn, (B, rg_output_size), dtype=jnp.float32)

    # Deterministic nn.Linear-style init: U(-1/sqrt(fan_in), 1/sqrt(fan_in)).
    fan_in = om_output_size + rg_output_size
    bound = 1.0 / (fan_in ** 0.5)
    w = jax.random.uniform(k_w, (self_output_size, fan_in),
                           minval=-bound, maxval=bound, dtype=jnp.float32)
    b = jax.random.uniform(k_b, (self_output_size,),
                           minval=-bound, maxval=bound, dtype=jnp.float32)

    # One-time parameter packing ("module init"); not on the per-call path.
    # On v6e/v7x, pass compute_dtype=jnp.bfloat16 here for bf16 MXU inputs
    # (accumulation / bias add stay f32 inside the kernel; relax the allclose
    # tolerance below accordingly).
    w_m, w_n, b2 = prepare_mlp_combination_params(
        w, b, om_output_size, rg_output_size)

    fwd = jax.jit(lambda a, c: mlp_feature_combination(a, c, w_m, w_n, b2))
    out = jax.block_until_ready(fwd(x_m, x_n))

    # Reference check in plain JAX (same semantics as the PyTorch forward).
    ref = jnp.concatenate([x_m, x_n], axis=-1) @ w.T + b
    assert out.shape == (B, self_output_size)
    assert jnp.allclose(out, ref, atol=1e-5, rtol=1e-5), \
        float(jnp.max(jnp.abs(out - ref)))

    print("KERNEL_OK")
</pallas_src>

<mosaic_0001>
module attributes {stable_mosaic.version = 11 : i64} {
  func.func @_mlp_combine_kernel(%arg0: i32, %arg1: memref<8x16xf32, #tpu.memory_space<vmem>>, %arg2: memref<8x16xf32, #tpu.memory_space<vmem>>, %arg3: memref<16x32xf32, #tpu.memory_space<vmem>>, %arg4: memref<16x32xf32, #tpu.memory_space<vmem>>, %arg5: memref<1x32xf32, #tpu.memory_space<vmem>>, %arg6: memref<8x32xf32, #tpu.memory_space<vmem>>) attributes {dimension_semantics = [#tpu.dimension_semantics<parallel>], iteration_bounds = array<i64: 1>, scalar_prefetch = 0 : i64, scratch_operands = 0 : i64, tpu.core_type = #tpu.core_type<tc>, window_params = [{transform_indices = @transform_0, window_bounds = array<i64: 8, 16>}, {transform_indices = @transform_1, window_bounds = array<i64: 8, 16>}, {pipeline_mode = #tpu.pipeline_mode<synchronous>, transform_indices = @transform_2, window_bounds = array<i64: 16, 32>}, {pipeline_mode = #tpu.pipeline_mode<synchronous>, transform_indices = @transform_3, window_bounds = array<i64: 16, 32>}, {pipeline_mode = #tpu.pipeline_mode<synchronous>, transform_indices = @transform_4, window_bounds = array<i64: 1, 32>}, {transform_indices = @transform_5, window_bounds = array<i64: 8, 32>}]} {
    %c0 = arith.constant 0 : index
    %c0_0 = arith.constant 0 : index
    %0 = vector.load %arg1[%c0, %c0_0] : memref<8x16xf32, #tpu.memory_space<vmem>>, vector<8x16xf32>
    %c0_1 = arith.constant 0 : index
    %c0_2 = arith.constant 0 : index
    %1 = vector.load %arg2[%c0_1, %c0_2] : memref<8x16xf32, #tpu.memory_space<vmem>>, vector<8x16xf32>
    %c0_3 = arith.constant 0 : index
    %c0_4 = arith.constant 0 : index
    %2 = vector.load %arg3[%c0_3, %c0_4] : memref<16x32xf32, #tpu.memory_space<vmem>>, vector<16x32xf32>
    %cst = arith.constant dense<0.000000e+00> : vector<8x32xf32>
    %3 = tpu.matmul %0, %2, %cst {dimension_numbers = #tpu.dot_dimension_numbers<[1], [0], [0], [1], [0, 0, 1, 1], [], []>} : vector<8x16xf32>, vector<16x32xf32>, vector<8x32xf32> -> vector<8x32xf32>
    %c0_5 = arith.constant 0 : index
    %c0_6 = arith.constant 0 : index
    %4 = vector.load %arg4[%c0_5, %c0_6] : memref<16x32xf32, #tpu.memory_space<vmem>>, vector<16x32xf32>
    %cst_7 = arith.constant dense<0.000000e+00> : vector<8x32xf32>
    %5 = tpu.matmul %1, %4, %cst_7 {dimension_numbers = #tpu.dot_dimension_numbers<[1], [0], [0], [1], [0, 0, 1, 1], [], []>} : vector<8x16xf32>, vector<16x32xf32>, vector<8x32xf32> -> vector<8x32xf32>
    %6 = arith.addf %3, %5 : vector<8x32xf32>
    %c0_8 = arith.constant 0 : index
    %c0_9 = arith.constant 0 : index
    %7 = vector.load %arg5[%c0_8, %c0_9] : memref<1x32xf32, #tpu.memory_space<vmem>>, vector<1x32xf32>
    %8 = vector.broadcast %7 : vector<1x32xf32> to vector<8x32xf32>
    %9 = arith.addf %6, %8 : vector<8x32xf32>
    %c0_10 = arith.constant 0 : index
    %c0_11 = arith.constant 0 : index
    %10 = vector.load %arg6[%c0_10, %c0_11] : memref<8x32xf32, #tpu.memory_space<vmem>>, vector<8x32xf32>
    tpu.vector_store %arg6[%c0_10, %c0_11], %9 {strides = array<i32>} : memref<8x32xf32, #tpu.memory_space<vmem>>, vector<8x32xf32>,
    return
  }
  func.func @transform_0(%arg0: i32) -> (i32, i32) {
    %c0_i32 = arith.constant 0 : i32
    %c0_i32_0 = arith.constant 0 : i32
    return %arg0, %c0_i32 : i32, i32
  }
  func.func @transform_1(%arg0: i32) -> (i32, i32) {
    %c0_i32 = arith.constant 0 : i32
    %c0_i32_0 = arith.constant 0 : i32
    return %arg0, %c0_i32 : i32, i32
  }
  func.func @transform_2(%arg0: i32) -> (i32, i32) {
    %c0_i32 = arith.constant 0 : i32
    %c0_i32_0 = arith.constant 0 : i32
    %c0_i32_1 = arith.constant 0 : i32
    return %c0_i32, %c0_i32_0 : i32, i32
  }
  func.func @transform_3(%arg0: i32) -> (i32, i32) {
    %c0_i32 = arith.constant 0 : i32
    %c0_i32_0 = arith.constant 0 : i32
    %c0_i32_1 = arith.constant 0 : i32
    return %c0_i32, %c0_i32_0 : i32, i32
  }
  func.func @transform_4(%arg0: i32) -> (i32, i32) {
    %c0_i32 = arith.constant 0 : i32
    %c0_i32_0 = arith.constant 0 : i32
    %c0_i32_1 = arith.constant 0 : i32
    return %c0_i32, %c0_i32_0 : i32, i32
  }
  func.func @transform_5(%arg0: i32) -> (i32, i32) {
    %c0_i32 = arith.constant 0 : i32
    %c0_i32_0 = arith.constant 0 : i32
    return %arg0, %c0_i32 : i32, i32
  }
}

</mosaic_0001>

<bundles_post_ra>
// kernel: _lambda_.1
= control target key start
LH: loop header
LB: loop body
LE: loop exit
PB: predicated region body
PF: predicated region fallthrough
CT: control target
= control target key end

     0   :  { %10 = vsyncpa [#allocation3], 0  ;;  %s512_s0 = inlined_call_operand.hbm [shape: f32[8,16], index: 0, kind: input, shape index: {}]   ;;  %s513_s1 = inlined_call_operand.hbm [shape: f32[8,16], index: 1, kind: input, shape index: {}]   ;;  %s514_s2 = inlined_call_operand.hbm [shape: f32[16,32], index: 2, kind: input, shape index: {}]   ;;  %s515_s3 = inlined_call_operand.hbm [shape: f32[16,32], index: 3, kind: input, shape index: {}]   ;;  %s516_s4 = inlined_call_operand.vmem [shape: f32[1,32], index: 4, kind: input, shape index: {}]   ;;  %s517_s5 = inlined_call_operand.hbm [shape: f32[8,32], index: 5, kind: output, shape index: {}]  }
   0x1   :  { %11 = vsyncpa [#allocation6], 0 }
   0x2   :  { %12 = vsyncpa [#allocation9], 0 }
   0x3   :  { %13 = vsyncpa [#allocation4], 0  ;;  %s409_s18 = smov [#allocation5]   ;;  %s410_s20 = smov [#allocation2]  }
   0x4   :  { %s30_s19 = sshll.u32 %s409_s18, 4  ;;  %s20_s21 = sshll.u32 %s410_s20, 4  ;;  %s31_s19 = int_to_ptr.vmem [resolvable:$true] %s30_s19  ;;  %s21_s21 = int_to_ptr.vmem [resolvable:$true] %s20_s21 }
   0x5   :  { %s291_s24 = scalar_lea.hbm %s513_s1, 128 }
   0x6   :  { %p292_p0 = scmp.ne.s32.totalorder %s513_s1, %s291_s24  ;;  %p295_p1 = scmp.lt.u32.totalorder %s291_s24, %s513_s1 }
   0x8   :  { %p297_p2 = pnand %p295_p1, %p292_p0 }
   0xa   :  { %300 = shalt.err (!%p297_p2)
}
   0xb   :  { %s301_s29 = scalar_lea.vmem %s31_s19, 128  ;;  %p306_p4 = scmp.lt.s32.totalorder %s31_s19, %s31_s19 }
   0xc   :  { %p302_p3 = scmp.ne.s32.totalorder %s31_s19, %s301_s29  ;;  %p307_p5 = scmp.lt.s32.totalorder %s301_s29, %s301_s29 }
   0xe   :  { %p308_p6 = por %p307_p5, %p306_p4 }
  0x10   :  { %p309_p7 = pnand %p308_p6, %p302_p3 }
  0x12   :  { %312 = shalt.err (!%p309_p7)
}
  0x13   :  { %33 = dma.hbm_to_vmem [thread:$0]  %s513_s1, 128, %s31_s19, [#allocation6]  }
  0x14   :  { %s313_s9 = scalar_lea.hbm %s512_s0, 128 }
  0x15   :  { %p314_p8 = scmp.ne.s32.totalorder %s512_s0, %s313_s9  ;;  %p317_p9 = scmp.lt.u32.totalorder %s313_s9, %s512_s0 }
  0x17   :  { %p319_p10 = pnand %p317_p9, %p314_p8 }
  0x19   :  { %322 = shalt.err (!%p319_p10)
}
  0x1a   :  { %s323_s14 = scalar_lea.vmem %s21_s21, 128  ;;  %p328_p12 = scmp.lt.s32.totalorder %s21_s21, %s21_s21 }
  0x1b   :  { %p324_p11 = scmp.ne.s32.totalorder %s21_s21, %s323_s14  ;;  %p329_p13 = scmp.lt.s32.totalorder %s323_s14, %s323_s14 }
  0x1d   :  { %p330_p0 = por %p329_p13, %p328_p12 }
  0x1f   :  { %p331_p1 = pnand %p330_p0, %p324_p11 }
  0x21   :  { %334 = shalt.err (!%p331_p1)
}
  0x22   :  { %23 = dma.hbm_to_vmem [thread:$0]  %s512_s0, 128, %s21_s21, [#allocation3]  }
  0x23   :  { %s411_s16 = smov [#allocation7]   ;;  %s335_s20 = scalar_lea.hbm %s514_s2, 256 }
  0x24   :  { %s39_s17 = sshll.u32 %s411_s16, 4  ;;  %p336_p2 = scmp.ne.s32.totalorder %s514_s2, %s335_s20  ;;  %s40_s17 = int_to_ptr.vmem [resolvable:$true] %s39_s17 }
  0x25   :  { %p339_p3 = scmp.lt.u32.totalorder %s335_s20, %s514_s2 }
  0x27   :  { %p341_p4 = pnand %p339_p3, %p336_p2 }
  0x29   :  { %344 = shalt.err (!%p341_p4)
}
  0x2a   :  { %s345_s26 = scalar_lea.vmem %s40_s17, 256  ;;  %p350_p6 = scmp.lt.s32.totalorder %s40_s17, %s40_s17 }
  0x2b   :  { %p346_p5 = scmp.ne.s32.totalorder %s40_s17, %s345_s26  ;;  %p351_p7 = scmp.lt.s32.totalorder %s345_s26, %s345_s26 }
  0x2d   :  { %p352_p8 = por %p351_p7, %p350_p6 }
  0x2f   :  { %p353_p9 = pnand %p352_p8, %p346_p5 }
  0x31   :  { %356 = shalt.err (!%p353_p9)
}
  0x32   :  { %s412_s0 = smov 128   ;;  %s413_s21 = smov 8  }
  0x33   :  { %45 = dma.hbm_to_vmem [thread:$0]  %s514_s2, 256, %s40_s17, [#allocation6], %s412_s0, %s412_s0, %s413_s21  }
  0x34   :  { %s414_s29 = smov [#allocation8]   ;;  %s357_s8 = scalar_lea.hbm %s515_s3, 256 }
  0x35   :  { %s51_s30 = sshll.u32 %s414_s29, 4  ;;  %p358_p10 = scmp.ne.s32.totalorder %s515_s3, %s357_s8  ;;  %s52_s30 = int_to_ptr.vmem [resolvable:$true] %s51_s30 }
  0x36   :  { %p361_p11 = scmp.lt.u32.totalorder %s357_s8, %s515_s3 }
  0x38   :  { %p363_p12 = pnand %p361_p11, %p358_p10 }
  0x3a   :  { %366 = shalt.err (!%p363_p12)
}
  0x3b   :  { %s367_s13 = scalar_lea.vmem %s52_s30, 256  ;;  %p372_p0 = scmp.lt.s32.totalorder %s52_s30, %s52_s30 }
  0x3c   :  { %p368_p13 = scmp.ne.s32.totalorder %s52_s30, %s367_s13  ;;  %p373_p1 = scmp.lt.s32.totalorder %s367_s13, %s367_s13 }
  0x3e   :  { %p374_p2 = por %p373_p1, %p372_p0 }
  0x40   :  { %p375_p3 = pnand %p374_p2, %p368_p13 }
  0x42   :  { %378 = shalt.err (!%p375_p3)
}
  0x43   :  { %57 = dma.hbm_to_vmem [thread:$0]  %s515_s3, 256, %s52_s30, [#allocation9], %s412_s0, %s412_s0, %s413_s21  }
  0x44   :  { %401 = dma.done.wait [#allocation3], 128  }
  0x45   :  { %402 = vsyncadd [#allocation3], 4294967168 }
  0x46   :  { %403 = dma.done.wait [#allocation6], 384  }
  0x47   :  { %404 = vsyncadd [#allocation6], 4294966912 }
  0x48   :  { %405 = dma.done.wait [#allocation9], 256  }
  0x49   :  { %406 = vsyncadd [#allocation9], 4294967040  ;;  %v415_v0 = vmov 0.0|0.0   ;;  %vm416_vm0 = vmmov 0   ;;  %v417_v1 = vmov 0.0   ;;  %v76_v2 = vld [vmem:[#allocation8] sm:$0xff] }
  0x4a   :  { %275 = vmatprep.subr.bf16.mxu0 %v415_v0  ;;  %278 = vmatprep.subr.bf16.mxu1 %v415_v0  ;;  %v77_v3 = vld [vmem:[#allocation8 + $0x8] sm:$0xff]  ;;  %v74_v4 = vld [vmem:[#allocation7] sm:$0xff]  ;;  %v75_v6 = vld [vmem:[#allocation7 + $0x8] sm:$0xff]  ;;  %vm78_vm1 = vcmask 130048   ;;  %s418_s15 = smov [#allocation10]   ;;  %vm233_vm2 = vcmask 261120  }
  0x4b   :  { %265 = vmatprep.mubr.msk.f32.mxu0 %vm416_vm0, %v417_v1  ;;  %272 = vmatprep.mubr.msk.f32.mxu1 %vm416_vm0, %v417_v1  ;;  %v276_v5 = vpack.c.bf16 %v77_v3, %v76_v2  ;;  %v279_v7 = vpack.c.bf16 %v75_v6, %v74_v4  ;;  %v73_v8 = vld [vmem:[#allocation5] sm:$0xff]  ;;  %v72_v9 = vld [vmem:[#allocation2] sm:$0xff]  ;;  %s241_s16 = sshll.u32 %s418_s15, 4  ;;  %s242_s16 = int_to_ptr.vmem [resolvable:$true] %s241_s16 }
  0x4c   :  { %v254_v12 = vld [vmem:[%s516_s4] ss:$0 sm:$0xff]  ;;  %s379_s17 = scalar_lea.vmem %s242_s16, 128  ;;  %p384_p5 = scmp.lt.s32.totalorder %s242_s16, %s242_s16 }
  0x4d   :  { %277 = vmatpush3.bf16.msra.mxu0 %v276_v5  ;;  %280 = vmatpush3.bf16.msra.mxu1 %v279_v7  ;;  %p380_p4 = scmp.ne.s32.totalorder %s242_s16, %s379_s17  ;;  %p385_p6 = scmp.lt.s32.totalorder %s379_s17, %s379_s17 }
  0x4f   :  { %p386_p7 = por %p385_p6, %p384_p5 }
  0x50   :  { %266 = vmatmul.mubr.msk.f32.vlgmr.msra.gmra.mrb[0].mxu0 %vm78_vm1, %v73_v8  ;;  %273 = vmatmul.mubr.msk.f32.vlgmr.msra.gmra.mrb[0].mxu1 %vm78_vm1, %v72_v9 }
  0x51   :  { %p387_p8 = pnand %p386_p7, %p380_p4 }
 0x123   :  { %v148_v10 = vpop.f32.mrb[0].mxu0  ;;  %v221_v11 = vpop.f32.mrb[0].mxu1 }
 0x124   :  { %v267_v13 = vpop.f32.mrb[1].mxu0  ;;  %v222_v14 = vadd.f32 %v221_v11, %v148_v10  ;;  %v274_v15 = vpop.f32.mrb[1].mxu1 }
 0x126   :  { %v232_v16 = vadd.f32 %v254_v12, %v222_v14 }
 0x128   :  { %234 = vst.msk [vmem:[#allocation10] sm:$0xff] %vm233_vm2, %v232_v16 }
 0x129   :  { %390 = shalt.err (!%p387_p8)
}
 0x12a   :  { %s391_s4 = scalar_lea.hbm %s517_s5, 128 }
 0x12b   :  { %p392_p9 = scmp.ne.s32.totalorder %s517_s5, %s391_s4  ;;  %p395_p10 = scmp.lt.u32.totalorder %s391_s4, %s517_s5 }
 0x12d   :  { %p397_p11 = pnand %p395_p10, %p392_p9 }
 0x12f   :  { %400 = shalt.err (!%p397_p11)
}
 0x130   :  { %244 = dma.vmem_to_hbm [thread:$0]  %s242_s16, 128, %s517_s5, [#allocation4]  }
 0x131   :  { %407 = dma.done.wait [#allocation4], 128  }
 0x132   :  { %408 = vsyncadd [#allocation4], 4294967168 }
 0x133   :  { %248 = vsyncpa [#allocation3], 1 }
 0x134   :  { %249 = vsyncpa [#allocation6], 1 }
 0x135   :  { %250 = vsyncpa [#allocation9], 1 }
 0x136   :  { %251 = vsyncpa [#allocation4], 1 }

</bundles_post_ra>
